<compile_context>
chip_gen: v5e
topology: v5e:2x2
jax: 0.10.0
libtpu: 0.0.40
codegen_flags: <defaults>
</compile_context>

<pallas_src>
import jax
import jax.numpy as jnp
from jax.experimental import pallas as pl
from jax.experimental.pallas import tpu as pltpu


def coordatt_kernel(x_ref, ph_ref, pw_ref, eh_ref, ew_ref,
                    w1_ref, b1_ref, wh_ref, bh_ref, ww_ref, bw_ref,
                    out_ref):
    nb = x_ref.shape[0]                 # static batch tile size

    ph = ph_ref[...]                    # (HW, H)  mean over W
    pw = pw_ref[...]                    # (HW, W)  mean over H
    eh = eh_ref[...]                    # (H, HW)  broadcast a_h along W
    ew = ew_ref[...]                    # (W, HW)  broadcast a_w along H
    w1 = w1_ref[...]                    # (mip, C) conv1 with BN folded in
    b1 = b1_ref[...]                    # (mip, 1)
    wh = wh_ref[...]                    # (C, mip)
    bh = bh_ref[...]                    # (C, 1)
    ww = ww_ref[...]                    # (C, mip)
    bw = bw_ref[...]                    # (C, 1)

    for b in range(nb):                 # static unroll over the batch tile
        xb = x_ref[b]                   # (C, HW), native dtype, lane-dense

        # --- mean pooling via MXU (keeps the lane axis dense, no reshape) ---
        x_h = jnp.dot(xb, ph, preferred_element_type=jnp.float32)   # (C, H)
        x_w = jnp.dot(xb, pw, preferred_element_type=jnp.float32)   # (C, W)

        # --- conv1 (1x1, BN folded) + h_swish; H and W paths separately ---
        y_h = jnp.dot(w1, x_h, preferred_element_type=jnp.float32) + b1  # (mip, H)
        y_w = jnp.dot(w1, x_w, preferred_element_type=jnp.float32) + b1  # (mip, W)
        y_h = y_h * jnp.clip(y_h + 3.0, 0.0, 6.0) * (1.0 / 6.0)
        y_w = y_w * jnp.clip(y_w + 3.0, 0.0, 6.0) * (1.0 / 6.0)

        # --- conv_h / conv_w (1x1) + sigmoid ---
        a_h = jax.nn.sigmoid(
            jnp.dot(wh, y_h, preferred_element_type=jnp.float32) + bh)   # (C, H)
        a_w = jax.nn.sigmoid(
            jnp.dot(ww, y_w, preferred_element_type=jnp.float32) + bw)   # (C, W)

        # --- broadcast gates back to the lane-dense (C, HW) layout via MXU ---
        A_h = jnp.dot(a_h, eh, preferred_element_type=jnp.float32)       # (C, HW)
        A_w = jnp.dot(a_w, ew, preferred_element_type=jnp.float32)       # (C, HW)

        gate = (A_h * A_w).astype(xb.dtype)
        out_ref[b] = xb * gate          # lane-dense, unmasked store


def _choose_nb(n, per_batch_bytes, *, target_bytes=1 << 20, max_nb=16):
    """Batch elements per grid step: big enough block, >=2 steps when N>=2."""
    nb = max(1, min(n, target_bytes // max(per_batch_bytes, 1)))
    nb = min(nb, max_nb)
    if n >= 2:
        nb = min(nb, (n + 1) // 2)      # keep >=2 grid steps (v7x dual-TC)
    while n % nb != 0:                  # prefer a divisor of N (no padded tail)
        nb -= 1
    return max(nb, 1)


def coord_att(x, params):
    """x: (N, C, H, W). params: dict of weights (see init_params)."""
    N, C, H, W = x.shape
    hw = H * W
    w1, b1, s1, t1 = params["w1"], params["b1"], params["s1"], params["t1"]
    wh, bh, ww, bw = params["wh"], params["bh"], params["ww"], params["bw"]
    assert wh.shape[0] == C, "CoordAtt needs oup == inp for the final multiply"

    # Fold eval-mode BatchNorm into conv1 (review item: fewer inputs / DMAs).
    w1f = (s1 * w1).astype(jnp.float32)          # (mip, C)
    b1f = (s1 * b1 + t1).astype(jnp.float32)     # (mip, 1)
    whf, bhf = wh.astype(jnp.float32), bh.astype(jnp.float32)
    wwf, bwf = ww.astype(jnp.float32), bw.astype(jnp.float32)

    # Constant pooling / expansion matrices (trace-time constants).
    rows = jnp.arange(hw)
    h_idx = rows // W
    w_idx = rows % W
    ph = (jax.nn.one_hot(h_idx, H, dtype=jnp.float32) / W).astype(x.dtype)  # (HW, H)
    pw = (jax.nn.one_hot(w_idx, W, dtype=jnp.float32) / H).astype(x.dtype)  # (HW, W)
    eh = jax.nn.one_hot(h_idx, H, dtype=jnp.float32).T                      # (H, HW)
    ew = jax.nn.one_hot(w_idx, W, dtype=jnp.float32).T                      # (W, HW)

    # Lane-dense view of x: (N, C, H*W) (free reshape on contiguous HBM).
    x2 = x.reshape(N, C, hw)

    itemsize = x.dtype.itemsize
    nb = _choose_nb(N, C * hw * itemsize)
    grid = (N // nb,)

    def param_spec(p):
        return pl.BlockSpec(p.shape, lambda n: (0, 0))

    grid_spec = pltpu.PrefetchScalarGridSpec(
        num_scalar_prefetch=0,
        grid=grid,
        in_specs=[
            pl.BlockSpec((nb, C, hw), lambda n: (n, 0, 0)),
            param_spec(ph), param_spec(pw), param_spec(eh), param_spec(ew),
            param_spec(w1f), param_spec(b1f),
            param_spec(whf), param_spec(bhf), param_spec(wwf), param_spec(bwf),
        ],
        out_specs=pl.BlockSpec((nb, C, hw), lambda n: (n, 0, 0)),
    )

    # Explicit VMEM budget: 2x double-buffered in + out blocks, params,
    # f32 intermediates; clamped to stay well inside v7x's 64 MiB physical.
    block_bytes = nb * C * hw * itemsize
    param_bytes = sum(int(p.size) * int(p.dtype.itemsize)
                      for p in (ph, pw, eh, ew, w1f, b1f, whf, bhf, wwf, bwf))
    vmem_limit = int(min(48 << 20,
                         max(16 << 20, 8 * block_bytes + 4 * param_bytes + (2 << 20))))

    out2 = pl.pallas_call(
        coordatt_kernel,
        out_shape=jax.ShapeDtypeStruct((N, C, hw), x.dtype),
        grid_spec=grid_spec,
        compiler_params=pltpu.CompilerParams(
            dimension_semantics=("parallel",),
            vmem_limit_bytes=vmem_limit),
    )(x2, ph, pw, eh, ew, w1f, b1f, whf, bhf, wwf, bwf)

    return out2.reshape(N, C, H, W)


def init_params(key, inp, oup, reduction=32, dtype=jnp.float32):
    """Deterministic synthetic parameters mirroring CoordAtt.__init__ shapes."""
    mip = max(8, inp // reduction)
    k1, k2, k3, k4, k5, k6 = jax.random.split(key, 6)
    # 1x1 conv weights: PyTorch (out, in, 1, 1) -> (out, in)
    w1 = 0.1 * jax.random.normal(k1, (mip, inp), dtype)
    b1 = 0.1 * jax.random.normal(k2, (mip, 1), dtype)
    wh = 0.1 * jax.random.normal(k3, (oup, mip), dtype)
    bh = 0.1 * jax.random.normal(k4, (oup, 1), dtype)
    ww = 0.1 * jax.random.normal(k5, (oup, mip), dtype)
    bw = 0.1 * jax.random.normal(k6, (oup, 1), dtype)
    # BatchNorm2d(mip) eval-mode with default init: gamma=1, beta=0, mean=0, var=1
    eps = 1e-5
    gamma = jnp.ones((mip, 1), dtype)
    beta = jnp.zeros((mip, 1), dtype)
    run_mean = jnp.zeros((mip, 1), dtype)
    run_var = jnp.ones((mip, 1), dtype)
    s1 = gamma / jnp.sqrt(run_var + eps)
    t1 = beta - run_mean * s1
    return dict(w1=w1, b1=b1, s1=s1, t1=t1, wh=wh, bh=bh, ww=ww, bw=bw)


def coord_att_ref(x, params):
    """Pure-JAX reference matching the PyTorch forward (eval-mode BN)."""
    N, C, H, W = x.shape
    x_h = jnp.mean(x, axis=3)                          # (N, C, H)
    x_w = jnp.mean(x, axis=2)                          # (N, C, W)
    y = jnp.concatenate([x_h, x_w], axis=2)            # (N, C, H+W)
    y = jnp.einsum("mc,ncs->nms", params["w1"], y) + params["b1"][None]
    y = y * params["s1"][None] + params["t1"][None]
    y = y * jnp.clip(y + 3.0, 0.0, 6.0) / 6.0
    y_h, y_w = y[:, :, :H], y[:, :, H:]
    a_h = jax.nn.sigmoid(jnp.einsum("om,nms->nos", params["wh"], y_h) + params["bh"][None])
    a_w = jax.nn.sigmoid(jnp.einsum("om,nms->nos", params["ww"], y_w) + params["bw"][None])
    return x * a_h[:, :, :, None] * a_w[:, :, None, :]


if __name__ == "__main__":
    N, C, H, W = 2, 4, 16, 16
    key = jax.random.PRNGKey(0)
    kx, kp = jax.random.split(key)
    x = jax.random.normal(kx, (N, C, H, W), jnp.float32)
    params = init_params(kp, inp=C, oup=C, reduction=32)

    out = jax.block_until_ready(coord_att(x, params))
    ref = coord_att_ref(x, params)

    assert out.shape == (N, C, H, W)
    assert jnp.allclose(out, ref, rtol=1e-3, atol=1e-4), "mismatch vs reference"

    print("KERNEL_OK")
</pallas_src>

<mosaic_0001>
module attributes {stable_mosaic.version = 11 : i64} {
  func.func @coordatt_kernel(%arg0: i32, %arg1: memref<1x4x256xf32, #tpu.memory_space<vmem>>, %arg2: memref<256x16xf32, #tpu.memory_space<vmem>>, %arg3: memref<256x16xf32, #tpu.memory_space<vmem>>, %arg4: memref<16x256xf32, #tpu.memory_space<vmem>>, %arg5: memref<16x256xf32, #tpu.memory_space<vmem>>, %arg6: memref<8x4xf32, #tpu.memory_space<vmem>>, %arg7: memref<8x1xf32, #tpu.memory_space<vmem>>, %arg8: memref<4x8xf32, #tpu.memory_space<vmem>>, %arg9: memref<4x1xf32, #tpu.memory_space<vmem>>, %arg10: memref<4x8xf32, #tpu.memory_space<vmem>>, %arg11: memref<4x1xf32, #tpu.memory_space<vmem>>, %arg12: memref<1x4x256xf32, #tpu.memory_space<vmem>>) attributes {dimension_semantics = [#tpu.dimension_semantics<parallel>], iteration_bounds = array<i64: 2>, scalar_prefetch = 0 : i64, scratch_operands = 0 : i64, tpu.core_type = #tpu.core_type<tc>, window_params = [{transform_indices = @transform_0, window_bounds = array<i64: 1, 4, 256>}, {pipeline_mode = #tpu.pipeline_mode<synchronous>, transform_indices = @transform_1, window_bounds = array<i64: 256, 16>}, {pipeline_mode = #tpu.pipeline_mode<synchronous>, transform_indices = @transform_2, window_bounds = array<i64: 256, 16>}, {pipeline_mode = #tpu.pipeline_mode<synchronous>, transform_indices = @transform_3, window_bounds = array<i64: 16, 256>}, {pipeline_mode = #tpu.pipeline_mode<synchronous>, transform_indices = @transform_4, window_bounds = array<i64: 16, 256>}, {pipeline_mode = #tpu.pipeline_mode<synchronous>, transform_indices = @transform_5, window_bounds = array<i64: 8, 4>}, {pipeline_mode = #tpu.pipeline_mode<synchronous>, transform_indices = @transform_6, window_bounds = array<i64: 8, 1>}, {pipeline_mode = #tpu.pipeline_mode<synchronous>, transform_indices = @transform_7, window_bounds = array<i64: 4, 8>}, {pipeline_mode = #tpu.pipeline_mode<synchronous>, transform_indices = @transform_8, window_bounds = array<i64: 4, 1>}, {pipeline_mode = #tpu.pipeline_mode<synchronous>, transform_indices = @transform_9, window_bounds = array<i64: 4, 8>}, {pipeline_mode = #tpu.pipeline_mode<synchronous>, transform_indices = @transform_10, window_bounds = array<i64: 4, 1>}, {transform_indices = @transform_11, window_bounds = array<i64: 1, 4, 256>}]} {
    %c0 = arith.constant 0 : index
    %c0_0 = arith.constant 0 : index
    %0 = vector.load %arg2[%c0, %c0_0] : memref<256x16xf32, #tpu.memory_space<vmem>>, vector<256x16xf32>
    %c0_1 = arith.constant 0 : index
    %c0_2 = arith.constant 0 : index
    %1 = vector.load %arg3[%c0_1, %c0_2] : memref<256x16xf32, #tpu.memory_space<vmem>>, vector<256x16xf32>
    %c0_3 = arith.constant 0 : index
    %c0_4 = arith.constant 0 : index
    %2 = vector.load %arg4[%c0_3, %c0_4] : memref<16x256xf32, #tpu.memory_space<vmem>>, vector<16x256xf32>
    %c0_5 = arith.constant 0 : index
    %c0_6 = arith.constant 0 : index
    %3 = vector.load %arg5[%c0_5, %c0_6] : memref<16x256xf32, #tpu.memory_space<vmem>>, vector<16x256xf32>
    %c0_7 = arith.constant 0 : index
    %c0_8 = arith.constant 0 : index
    %4 = vector.load %arg6[%c0_7, %c0_8] : memref<8x4xf32, #tpu.memory_space<vmem>>, vector<8x4xf32>
    %c0_9 = arith.constant 0 : index
    %c0_10 = arith.constant 0 : index
    %5 = vector.load %arg7[%c0_9, %c0_10] : memref<8x1xf32, #tpu.memory_space<vmem>>, vector<8x1xf32>
    %c0_11 = arith.constant 0 : index
    %c0_12 = arith.constant 0 : index
    %6 = vector.load %arg8[%c0_11, %c0_12] : memref<4x8xf32, #tpu.memory_space<vmem>>, vector<4x8xf32>
    %c0_13 = arith.constant 0 : index
    %c0_14 = arith.constant 0 : index
    %7 = vector.load %arg9[%c0_13, %c0_14] : memref<4x1xf32, #tpu.memory_space<vmem>>, vector<4x1xf32>
    %c0_15 = arith.constant 0 : index
    %c0_16 = arith.constant 0 : index
    %8 = vector.load %arg10[%c0_15, %c0_16] : memref<4x8xf32, #tpu.memory_space<vmem>>, vector<4x8xf32>
    %c0_17 = arith.constant 0 : index
    %c0_18 = arith.constant 0 : index
    %9 = vector.load %arg11[%c0_17, %c0_18] : memref<4x1xf32, #tpu.memory_space<vmem>>, vector<4x1xf32>
    %c0_19 = arith.constant 0 : index
    %c0_20 = arith.constant 0 : index
    %c0_21 = arith.constant 0 : index
    %10 = vector.load %arg1[%c0_19, %c0_20, %c0_21] : memref<1x4x256xf32, #tpu.memory_space<vmem>>, vector<1x4x256xf32>
    %11 = vector.shape_cast %10 : vector<1x4x256xf32> to vector<4x256xf32>
    %cst = arith.constant dense<0.000000e+00> : vector<4x16xf32>
    %12 = tpu.matmul %11, %0, %cst {dimension_numbers = #tpu.dot_dimension_numbers<[1], [0], [0], [1], [0, 0, 1, 1], [], []>} : vector<4x256xf32>, vector<256x16xf32>, vector<4x16xf32> -> vector<4x16xf32>
    %cst_22 = arith.constant dense<0.000000e+00> : vector<4x16xf32>
    %13 = tpu.matmul %11, %1, %cst_22 {dimension_numbers = #tpu.dot_dimension_numbers<[1], [0], [0], [1], [0, 0, 1, 1], [], []>} : vector<4x256xf32>, vector<256x16xf32>, vector<4x16xf32> -> vector<4x16xf32>
    %cst_23 = arith.constant dense<0.000000e+00> : vector<8x16xf32>
    %14 = tpu.matmul %4, %12, %cst_23 {dimension_numbers = #tpu.dot_dimension_numbers<[1], [0], [0], [1], [0, 0, 1, 1], [], []>} : vector<8x4xf32>, vector<4x16xf32>, vector<8x16xf32> -> vector<8x16xf32>
    %15 = vector.broadcast %5 : vector<8x1xf32> to vector<8x16xf32>
    %16 = arith.addf %14, %15 : vector<8x16xf32>
    %cst_24 = arith.constant dense<0.000000e+00> : vector<8x16xf32>
    %17 = tpu.matmul %4, %13, %cst_24 {dimension_numbers = #tpu.dot_dimension_numbers<[1], [0], [0], [1], [0, 0, 1, 1], [], []>} : vector<8x4xf32>, vector<4x16xf32>, vector<8x16xf32> -> vector<8x16xf32>
    %18 = vector.broadcast %5 : vector<8x1xf32> to vector<8x16xf32>
    %19 = arith.addf %17, %18 : vector<8x16xf32>
    %cst_25 = arith.constant 3.000000e+00 : f32
    %20 = vector.broadcast %cst_25 : f32 to vector<8x16xf32>
    %21 = arith.addf %16, %20 : vector<8x16xf32>
    %cst_26 = arith.constant 0.000000e+00 : f32
    %cst_27 = arith.constant 6.000000e+00 : f32
    %22 = vector.broadcast %cst_26 : f32 to vector<8x16xf32>
    %23 = arith.maximumf %22, %21 : vector<8x16xf32>
    %24 = vector.broadcast %cst_27 : f32 to vector<8x16xf32>
    %25 = arith.minimumf %24, %23 : vector<8x16xf32>
    %26 = arith.mulf %16, %25 : vector<8x16xf32>
    %cst_28 = arith.constant 0.166666672 : f32
    %27 = vector.broadcast %cst_28 : f32 to vector<8x16xf32>
    %28 = arith.mulf %26, %27 : vector<8x16xf32>
    %cst_29 = arith.constant 3.000000e+00 : f32
    %29 = vector.broadcast %cst_29 : f32 to vector<8x16xf32>
    %30 = arith.addf %19, %29 : vector<8x16xf32>
    %cst_30 = arith.constant 0.000000e+00 : f32
    %cst_31 = arith.constant 6.000000e+00 : f32
    %31 = vector.broadcast %cst_30 : f32 to vector<8x16xf32>
    %32 = arith.maximumf %31, %30 : vector<8x16xf32>
    %33 = vector.broadcast %cst_31 : f32 to vector<8x16xf32>
    %34 = arith.minimumf %33, %32 : vector<8x16xf32>
    %35 = arith.mulf %19, %34 : vector<8x16xf32>
    %cst_32 = arith.constant 0.166666672 : f32
    %36 = vector.broadcast %cst_32 : f32 to vector<8x16xf32>
    %37 = arith.mulf %35, %36 : vector<8x16xf32>
    %cst_33 = arith.constant dense<0.000000e+00> : vector<4x16xf32>
    %38 = tpu.matmul %6, %28, %cst_33 {dimension_numbers = #tpu.dot_dimension_numbers<[1], [0], [0], [1], [0, 0, 1, 1], [], []>} : vector<4x8xf32>, vector<8x16xf32>, vector<4x16xf32> -> vector<4x16xf32>
    %39 = vector.broadcast %7 : vector<4x1xf32> to vector<4x16xf32>
    %40 = arith.addf %38, %39 : vector<4x16xf32>
    %41 = arith.negf %40 : vector<4x16xf32>
    %42 = math.exp %41 : vector<4x16xf32>
    %cst_34 = arith.constant 1.000000e+00 : f32
    %43 = vector.broadcast %cst_34 : f32 to vector<4x16xf32>
    %44 = arith.addf %43, %42 : vector<4x16xf32>
    %45 = arith.divf %43, %44 : vector<4x16xf32>
    %cst_35 = arith.constant dense<0.000000e+00> : vector<4x16xf32>
    %46 = tpu.matmul %8, %37, %cst_35 {dimension_numbers = #tpu.dot_dimension_numbers<[1], [0], [0], [1], [0, 0, 1, 1], [], []>} : vector<4x8xf32>, vector<8x16xf32>, vector<4x16xf32> -> vector<4x16xf32>
    %47 = vector.broadcast %9 : vector<4x1xf32> to vector<4x16xf32>
    %48 = arith.addf %46, %47 : vector<4x16xf32>
    %49 = arith.negf %48 : vector<4x16xf32>
    %50 = math.exp %49 : vector<4x16xf32>
    %cst_36 = arith.constant 1.000000e+00 : f32
    %51 = vector.broadcast %cst_36 : f32 to vector<4x16xf32>
    %52 = arith.addf %51, %50 : vector<4x16xf32>
    %53 = arith.divf %51, %52 : vector<4x16xf32>
    %cst_37 = arith.constant dense<0.000000e+00> : vector<4x256xf32>
    %54 = tpu.matmul %45, %2, %cst_37 {dimension_numbers = #tpu.dot_dimension_numbers<[1], [0], [0], [1], [0, 0, 1, 1], [], []>} : vector<4x16xf32>, vector<16x256xf32>, vector<4x256xf32> -> vector<4x256xf32>
    %cst_38 = arith.constant dense<0.000000e+00> : vector<4x256xf32>
    %55 = tpu.matmul %53, %3, %cst_38 {dimension_numbers = #tpu.dot_dimension_numbers<[1], [0], [0], [1], [0, 0, 1, 1], [], []>} : vector<4x16xf32>, vector<16x256xf32>, vector<4x256xf32> -> vector<4x256xf32>
    %56 = arith.mulf %54, %55 : vector<4x256xf32>
    %57 = arith.mulf %11, %56 : vector<4x256xf32>
    %c0_39 = arith.constant 0 : index
    %c0_40 = arith.constant 0 : index
    %c0_41 = arith.constant 0 : index
    %58 = vector.load %arg12[%c0_39, %c0_40, %c0_41] : memref<1x4x256xf32, #tpu.memory_space<vmem>>, vector<1x4x256xf32>
    %59 = vector.shape_cast %58 : vector<1x4x256xf32> to vector<4x256xf32>
    %60 = vector.shape_cast %57 : vector<4x256xf32> to vector<1x4x256xf32>
    tpu.vector_store %arg12[%c0_39, %c0_40, %c0_41], %60 {strides = array<i32>} : memref<1x4x256xf32, #tpu.memory_space<vmem>>, vector<1x4x256xf32>,
    return
  }
  func.func @transform_0(%arg0: i32) -> (i32, i32, i32) {
    %c0_i32 = arith.constant 0 : i32
    %c0_i32_0 = arith.constant 0 : i32
    %c0_i32_1 = arith.constant 0 : i32
    return %arg0, %c0_i32, %c0_i32_0 : i32, i32, i32
  }
  func.func @transform_1(%arg0: i32) -> (i32, i32) {
    %c0_i32 = arith.constant 0 : i32
    %c0_i32_0 = arith.constant 0 : i32
    %c0_i32_1 = arith.constant 0 : i32
    return %c0_i32, %c0_i32_0 : i32, i32
  }
  func.func @transform_2(%arg0: i32) -> (i32, i32) {
    %c0_i32 = arith.constant 0 : i32
    %c0_i32_0 = arith.constant 0 : i32
    %c0_i32_1 = arith.constant 0 : i32
    return %c0_i32, %c0_i32_0 : i32, i32
  }
  func.func @transform_3(%arg0: i32) -> (i32, i32) {
    %c0_i32 = arith.constant 0 : i32
    %c0_i32_0 = arith.constant 0 : i32
    %c0_i32_1 = arith.constant 0 : i32
    return %c0_i32, %c0_i32_0 : i32, i32
  }
  func.func @transform_4(%arg0: i32) -> (i32, i32) {
    %c0_i32 = arith.constant 0 : i32
    %c0_i32_0 = arith.constant 0 : i32
    %c0_i32_1 = arith.constant 0 : i32
    return %c0_i32, %c0_i32_0 : i32, i32
  }
  func.func @transform_5(%arg0: i32) -> (i32, i32) {
    %c0_i32 = arith.constant 0 : i32
    %c0_i32_0 = arith.constant 0 : i32
    %c0_i32_1 = arith.constant 0 : i32
    return %c0_i32, %c0_i32_0 : i32, i32
  }
  func.func @transform_6(%arg0: i32) -> (i32, i32) {
    %c0_i32 = arith.constant 0 : i32
    %c0_i32_0 = arith.constant 0 : i32
    %c0_i32_1 = arith.constant 0 : i32
    return %c0_i32, %c0_i32_0 : i32, i32
  }
  func.func @transform_7(%arg0: i32) -> (i32, i32) {
    %c0_i32 = arith.constant 0 : i32
    %c0_i32_0 = arith.constant 0 : i32
    %c0_i32_1 = arith.constant 0 : i32
    return %c0_i32, %c0_i32_0 : i32, i32
  }
  func.func @transform_8(%arg0: i32) -> (i32, i32) {
    %c0_i32 = arith.constant 0 : i32
    %c0_i32_0 = arith.constant 0 : i32
    %c0_i32_1 = arith.constant 0 : i32
    return %c0_i32, %c0_i32_0 : i32, i32
  }
  func.func @transform_9(%arg0: i32) -> (i32, i32) {
    %c0_i32 = arith.constant 0 : i32
    %c0_i32_0 = arith.constant 0 : i32
    %c0_i32_1 = arith.constant 0 : i32
    return %c0_i32, %c0_i32_0 : i32, i32
  }
  func.func @transform_10(%arg0: i32) -> (i32, i32) {
    %c0_i32 = arith.constant 0 : i32
    %c0_i32_0 = arith.constant 0 : i32
    %c0_i32_1 = arith.constant 0 : i32
    return %c0_i32, %c0_i32_0 : i32, i32
  }
  func.func @transform_11(%arg0: i32) -> (i32, i32, i32) {
    %c0_i32 = arith.constant 0 : i32
    %c0_i32_0 = arith.constant 0 : i32
    %c0_i32_1 = arith.constant 0 : i32
    return %arg0, %c0_i32, %c0_i32_0 : i32, i32, i32
  }
}

</mosaic_0001>

<bundles_post_ra>
// kernel: tpu_custom_call.1
= control target key start
LH: loop header
LB: loop body
LE: loop exit
PB: predicated region body
PF: predicated region fallthrough
CT: control target
= control target key end

     0   :  { %16 = vsyncpa [#allocation3], 0  ;;  %s1425_s0 = inlined_call_operand.vmem [shape: f32[2,4,256], index: 0, kind: input, shape index: {}]   ;;  %s1426_s1 = inlined_call_operand.vmem [shape: f32[256,16], index: 1, kind: input, shape index: {}]   ;;  %s1427_s2 = inlined_call_operand.vmem [shape: f32[256,16], index: 2, kind: input, shape index: {}]   ;;  %s1428_s3 = inlined_call_operand.vmem [shape: f32[16,256], index: 3, kind: input, shape index: {}]   ;;  %s1429_s4 = inlined_call_operand.vmem [shape: f32[16,256], index: 4, kind: input, shape index: {}]   ;;  %s1430_s5 = inlined_call_operand.vmem [shape: f32[8,4], index: 5, kind: input, shape index: {}]   ;;  %s1431_s6 = inlined_call_operand.vmem [shape: f32[8,1], index: 6, kind: input, shape index: {}]   ;;  %s1432_s7 = inlined_call_operand.vmem [shape: f32[4,8], index: 7, kind: input, shape index: {}]   ;;  %s1433_s8 = inlined_call_operand.vmem [shape: f32[4,1], index: 8, kind: input, shape index: {}]   ;;  %s1434_s9 = inlined_call_operand.vmem [shape: f32[4,8], index: 9, kind: input, shape index: {}]   ;;  %s1435_s10 = inlined_call_operand.vmem [shape: f32[4,1], index: 10, kind: input, shape index: {}]   ;;  %s1436_s11 = inlined_call_operand.hbm [shape: f32[2,4,256], index: 11, kind: output, shape index: {}]  }
   0x1   :  { %18 = vsyncpa [#allocation3 + $0x1], 0  ;;  %s1089_s17 = smov 0   ;;  %s1091_s18 = smov 0  }
   0x2   :  { %s1093_s19 = smov 0   ;;  %s1095_s20 = smov 0  }
   0x3 LB: > { %1438 = sst [smem:[#allocation5_spill]] %s1022_s19  ;;  %s1110_s21 = sadd.s32 4294967295, %s1026_s20   ;;  %s1026_s20 = sphi %s1095_s20, %s1447_s20   ;;  %s1022_s19 = sphi %s1093_s19, %s1446_s19   ;;  %s1018_s18 = sphi %s1091_s18, %s1445_s18   ;;  %s1014_s17 = sphi %s1089_s17, %s1444_s17  }
   0x4   : > { %s888_s22 = sadd.s32 4294967294, %s1026_s20   ;;  %s1114_s23 = sadd.s32 1, %s1026_s20  }
   0x5   : > { %s267_s24 = sadd.s32 1, %s1022_s19  ;;  %s264_s25 = ssub.s32 %s1026_s20, %s1114_s23 }
   0x6   : > { %p277_p0 = scmp.ne.s32.totalorder %s1022_s19, %s1018_s18  ;;  %p265_p1 = scmp.eq.s32.totalorder %s264_s25, 0 }
   0x7   : > { %p278_p2 = scmp.eq.s32.totalorder %s1110_s21, 1  ;;  %p283_p3 = scmp.ne.s32.totalorder %s1018_s18, %s1014_s17 }
   0x8   : > { %p284_p4 = scmp.eq.s32.totalorder %s888_s22, 1  ;;  %p891_p7 = scmp.ge.s32.totalorder %s1026_s20, 1 }
   0x9   : > { %s1125_s26 = scalar_select %p265_p1, %s1022_s19, %s267_s24  }
   0xa   : > { %p1127_p5 = por %p278_p2, %p277_p0  ;;  %p1131_p6 = por %p284_p4, %p283_p3 }
   0xb   : > { %1439 = sst [smem:[#allocation6_spill]] %s1125_s26  ;;  %p340_p8 = scmp.lt.s32.totalorder %s1026_s20, 3 }
   0xd   : > { %p341_p9 = pnand %p891_p7, %p340_p8 }
   0xe   : > { %p380_p10 = scmp.lt.s32.totalorder (!%p341_p9), %s1110_s21, 1  ;;  %s377_s25 = sand.u32 (!%p341_p9), 1, %s1018_s18  }
   0xf   : > { %344 = sbr.rel (%p341_p9) target bundleno = 636 (0x27c), region = 64  ;;  %s892_s29 = sshll.u32 (!%p341_p9), %s377_s25, 3 }
  0x10   : > { %s913_s30 = sshll.u32 (!%p341_p9), %s1110_s21, 3 }
  0x11   : > { %s824_s14 = scalar_lea.hbm (!%p341_p9), %s1436_s11, %s913_s30 }
  0x14   : > { %v400_v0 = vld [vmem:[%s1426_s1 + $0x78] sm:$0xff]  ;;  %v399_v4 = vld [vmem:[%s1426_s1 + $0x70] sm:$0xff]  ;;  %v398_v8 = vld [vmem:[%s1426_s1 + $0x68] sm:$0xff]  ;;  %s1225_s16 = scalar_select %p380_p10, %s1110_s21, 1  ;;  %vm564_vm0 = vcmask 1043456   ;;  %vm560_vm1 = vcmask 31744  }
  0x15   : > { %v416_v1 = vld [vmem:[%s1426_s1 + $0xf8] sm:$0xff]  ;;  %470 = vmatpush.msra.mxu0 %v400_v0  ;;  %v415_v5 = vld [vmem:[%s1426_s1 + $0xf0] sm:$0xff]  ;;  %v414_v9 = vld [vmem:[%s1426_s1 + $0xe8] sm:$0xff]  ;;  %vm626_vm2 = vcmask 64512   ;;  %vm716_vm7 = vcmask 130048   ;;  %s813_s21 = scalar_lea.sflag [#allocation3], %s377_s25 }
  0x16   : > { %v432_v2 = vld [vmem:[%s1427_s2 + $0x78] sm:$0xff]  ;;  %490 = vmatpush.msra.mxu1 %v416_v1  ;;  %v431_v6 = vld [vmem:[%s1427_s2 + $0x70] sm:$0xff]  ;;  %v430_v10 = vld [vmem:[%s1427_s2 + $0x68] sm:$0xff]  ;;  %s912_s13 = sshll.u32 %s1225_s16, 3 }
  0x17   : > { %v448_v3 = vld [vmem:[%s1427_s2 + $0xf8] sm:$0xff]  ;;  %515 = vmatpush.msra.mxu2 %v432_v2  ;;  %v447_v7 = vld [vmem:[%s1427_s2 + $0xf0] sm:$0xff]  ;;  %471 = vmatpush.msra.mxu0 %v399_v4  ;;  %v446_v11 = vld [vmem:[%s1427_s2 + $0xe8] sm:$0xff]  ;;  %s384_s19 = scalar_lea.vmem %s1425_s0, %s912_s13  ;;  %s828_s13 = sshll.u32 %s824_s14, 4  ;;  %s829_s13 = int_to_ptr.hbm [resolvable:$true] %s828_s13 }
  0x18   : > { %535 = vmatpush.msra.mxu3 %v448_v3  ;;  %491 = vmatpush.msra.mxu1 %v415_v5  ;;  %v397_v12 = vld [vmem:[%s1426_s1 + $0x60] sm:$0xff]  ;;  %v396_v16 = vld [vmem:[%s1426_s1 + $0x58] sm:$0xff]  ;;  %v395_v20 = vld [vmem:[%s1426_s1 + $0x50] sm:$0xff]  ;;  %s978_s15 = sshra.s32 %s829_s13, 4  ;;  %s979_s15 = int_to_ptr.hbm [resolvable:$true] %s978_s15 }
  0x19   : > { %516 = vmatpush.msra.mxu2 %v431_v6  ;;  %v413_v13 = vld [vmem:[%s1426_s1 + $0xe0] sm:$0xff]  ;;  %472 = vmatpush.msra.mxu0 %v398_v8  ;;  %v412_v17 = vld [vmem:[%s1426_s1 + $0xd8] sm:$0xff]  ;;  %v411_v21 = vld [vmem:[%s1426_s1 + $0xd0] sm:$0xff]  ;;  %v1028_v6 = vmov 0   ;;  %s980_s22 = scalar_lea.hbm %s979_s15, 8  ;;  %p985_p0 = scmp.lt.s32.totalorder %s979_s15, %s1436_s11 }
  0x1a   : > { %536 = vmatpush.msra.mxu3 %v447_v7  ;;  %492 = vmatpush.msra.mxu1 %v414_v9  ;;  %v429_v14 = vld [vmem:[%s1427_s2 + $0x60] sm:$0xff]  ;;  %v428_v18 = vld [vmem:[%s1427_s2 + $0x58] sm:$0xff]  ;;  %v427_v22 = vld [vmem:[%s1427_s2 + $0x50] sm:$0xff]  ;;  %p981_p11 = scmp.ne.s32.totalorder %s979_s15, %s980_s22 }
  0x1b   : > { %v445_v15 = vld [vmem:[%s1427_s2 + $0xe0] sm:$0xff]  ;;  %517 = vmatpush.msra.mxu2 %v430_v10  ;;  %473 = vmatpush.msra.mxu0 %v397_v12  ;;  %v444_v19 = vld [vmem:[%s1427_s2 + $0xd8] sm:$0xff]  ;;  %v443_v23 = vld [vmem:[%s1427_s2 + $0xd0] sm:$0xff] }
  0x1c   : > { %537 = vmatpush.msra.mxu3 %v446_v11  ;;  %493 = vmatpush.msra.mxu1 %v413_v13  ;;  %v394_v24 = vld [vmem:[%s1426_s1 + $0x48] sm:$0xff]  ;;  %v393_v28 = vld [vmem:[%s1426_s1 + $0x40] sm:$0xff]  ;;  %v392_v32 = vld [vmem:[%s1426_s1 + $0x38] sm:$0xff]  ;;  %p982_p12 = pnand %p981_p11, %p1127_p5 }
  0x1d   : > { %518 = vmatpush.msra.mxu2 %v429_v14  ;;  %474 = vmatpush.msra.mxu0 %v396_v16  ;;  %v410_v25 = vld [vmem:[%s1426_s1 + $0xc8] sm:$0xff]  ;;  %v409_v29 = vld [vmem:[%s1426_s1 + $0xc0] sm:$0xff]  ;;  %v408_v33 = vld [vmem:[%s1426_s1 + $0xb8] sm:$0xff] }
  0x1e   : > { %538 = vmatpush.msra.mxu3 %v445_v15  ;;  %494 = vmatpush.msra.mxu1 %v412_v17  ;;  %v426_v26 = vld [vmem:[%s1427_s2 + $0x48] sm:$0xff]  ;;  %v425_v30 = vld [vmem:[%s1427_s2 + $0x40] sm:$0xff]  ;;  %v424_v34 = vld [vmem:[%s1427_s2 + $0x38] sm:$0xff]  ;;  %p983_p13 = pneg %p982_p12 }
  0x1f   : > { %519 = vmatpush.msra.mxu2 %v428_v18  ;;  %475 = vmatpush.msra.mxu0 %v395_v20  ;;  %v442_v27 = vld [vmem:[%s1427_s2 + $0xc8] sm:$0xff]  ;;  %v441_v31 = vld [vmem:[%s1427_s2 + $0xc0] sm:$0xff]  ;;  %v440_v35 = vld [vmem:[%s1427_s2 + $0xb8] sm:$0xff] }
  0x20   : > { %539 = vmatpush.msra.mxu3 %v444_v19  ;;  %495 = vmatpush.msra.mxu1 %v411_v21  ;;  %v391_v36 = vld [vmem:[%s1426_s1 + $0x30] sm:$0xff]  ;;  %v390_v40 = vld [vmem:[%s1426_s1 + $0x28] sm:$0xff]  ;;  %v389_v44 = vld [vmem:[%s1426_s1 + $0x20] sm:$0xff] }
  0x21   : > { %520 = vmatpush.msra.mxu2 %v427_v22  ;;  %476 = vmatpush.msra.mxu0 %v394_v24  ;;  %v407_v37 = vld [vmem:[%s1426_s1 + $0xb0] sm:$0xff]  ;;  %v406_v41 = vld [vmem:[%s1426_s1 + $0xa8] sm:$0xff]  ;;  %v405_v45 = vld [vmem:[%s1426_s1 + $0xa0] sm:$0xff] }
  0x22   : > { %540 = vmatpush.msra.mxu3 %v443_v23  ;;  %496 = vmatpush.msra.mxu1 %v410_v25  ;;  %v423_v38 = vld [vmem:[%s1427_s2 + $0x30] sm:$0xff]  ;;  %v422_v42 = vld [vmem:[%s1427_s2 + $0x28] sm:$0xff]  ;;  %v421_v46 = vld [vmem:[%s1427_s2 + $0x20] sm:$0xff] }
  0x23   : > { %521 = vmatpush.msra.mxu2 %v426_v26  ;;  %477 = vmatpush.msra.mxu0 %v393_v28  ;;  %v439_v39 = vld [vmem:[%s1427_s2 + $0xb0] sm:$0xff]  ;;  %v438_v43 = vld [vmem:[%s1427_s2 + $0xa8] sm:$0xff]  ;;  %v437_v47 = vld [vmem:[%s1427_s2 + $0xa0] sm:$0xff] }
  0x24   : > { %541 = vmatpush.msra.mxu3 %v442_v27  ;;  %497 = vmatpush.msra.mxu1 %v409_v29  ;;  %v1291_v48 = vld [vmem:[%s384_s19] sm:$0xff]  ;;  %v388_v49 = vld [vmem:[%s1426_s1 + $0x18] sm:$0xff]  ;;  %v387_v53 = vld [vmem:[%s1426_s1 + $0x10] sm:$0xff]  ;;  %s379_s19 = scalar_lea.vmem [#allocation2], %s892_s29  ;;  %s984_s29 = scalar_lea.hbm %s1436_s11, 16 }
  0x25   : > { %522 = vmatpush.msra.mxu2 %v425_v30  ;;  %478 = vmatpush.msra.mxu0 %v392_v32  ;;  %v404_v50 = vld [vmem:[%s1426_s1 + $0x98] sm:$0xff]  ;;  %465 = vst [vmem:[#allocation1] ss:$2 sm:$0xff] %v1291_v48  ;;  %v403_v54 = vld [vmem:[%s1426_s1 + $0x90] sm:$0xff]  ;;  %v386_v57 = vld [vmem:[%s1426_s1 + $0x8] sm:$0xff]  ;;  %s826_s26 = sshll.u32 %s379_s19, 4  ;;  %p986_p1 = scmp.lt.s32.totalorder %s984_s29, %s980_s22  ;;  %s827_s26 = int_to_ptr.vmem [resolvable:$true] %s826_s26 }
  0x26   : > { %542 = vmatpush.msra.mxu3 %v441_v31  ;;  %498 = vmatpush.msra.mxu1 %v408_v33  ;;  %v420_v51 = vld [vmem:[%s1427_s2 + $0x18] sm:$0xff]  ;;  %v419_v55 = vld [vmem:[%s1427_s2 + $0x10] sm:$0xff]  ;;  %v402_v58 = vld [vmem:[%s1426_s1 + $0x88] sm:$0xff] }
  0x27   : > { %523 = vmatpush.msra.mxu2 %v424_v34  ;;  %479 = vmatpush.msra.mxu0 %v391_v36  ;;  %v436_v52 = vld [vmem:[%s1427_s2 + $0x98] sm:$0xff]  ;;  %v435_v56 = vld [vmem:[%s1427_s2 + $0x90] sm:$0xff]  ;;  %v418_v59 = vld [vmem:[%s1427_s2 + $0x8] sm:$0xff]  ;;  %p987_p2 = por %p986_p1, %p985_p0 }
  0x28   : > { %543 = vmatpush.msra.mxu3 %v440_v35  ;;  %499 = vmatpush.msra.mxu1 %v407_v37  ;;  %v434_v60 = vld [vmem:[%s1427_s2 + $0x88] sm:$0xff]  ;;  %v385_v61 = vld [vmem:[%s1426_s1] sm:$0xff]  ;;  %v451_v35 = vld [vmem:[%s1428_s3 + $0x10] sm:$0xff] }
  0x29   : > { %524 = vmatpush.msra.mxu2 %v423_v38  ;;  %480 = vmatpush.msra.mxu0 %v390_v40  ;;  %v401_v62 = vld [vmem:[%s1426_s1 + $0x80] sm:$0xff]  ;;  %v452_v36 = vld [vmem:[%s1428_s3 + $0x18] sm:$0xff]  ;;  %v455_v38 = vld [vmem:[%s1429_s4 + $0x10] sm:$0xff]  ;;  %p988_p3 = pnand %p987_p2, %p983_p13 }
  0x2a   : > { %544 = vmatpush.msra.mxu3 %v439_v39  ;;  %500 = vmatpush.msra.mxu1 %v406_v41  ;;  %v417_v63 = vld [vmem:[%s1427_s2] sm:$0xff]  ;;  %v456_v39 = vld [vmem:[%s1429_s4 + $0x18] sm:$0xff] }
  0x2b   : > { %525 = vmatpush.msra.mxu2 %v422_v42  ;;  %481 = vmatpush.msra.mxu0 %v389_v44  ;;  %v433_v0 = vld [vmem:[%s1427_s2 + $0x80] sm:$0xff]  ;;  %v450_v42 = vld [vmem:[%s1428_s3 + $0x8] sm:$0xff] }
  0x2c   : > { %545 = vmatpush.msra.mxu3 %v438_v43  ;;  %501 = vmatpush.msra.mxu1 %v405_v45  ;;  %v466_v1 = vld.sshfl [vmem:[#allocation1] sm:$0xff pattern:$0x75316420]  ;;  %v467_v2 = vld.sshfl [vmem:[#allocation1 + $0x8] sm:$0xff pattern:$0x75316420] }
  0x2d   : > { %526 = vmatpush.msra.mxu2 %v421_v46  ;;  %482 = vmatpush.msra.mxu0 %v388_v49  ;;  %510 = vst [vmem:[#allocation1] ss:$2 sm:$0xff] %v1291_v48  ;;  %v458_v5 = vld [vmem:[%s1431_s6] sm:$0xff]  ;;  %v454_v44 = vld [vmem:[%s1429_s4 + $0x8] sm:$0xff] }
  0x2e   : > { %546 = vmatpush.msra.mxu3 %v437_v47  ;;  %502 = vmatpush.msra.mxu1 %v404_v50  ;;  %v462_v7 = vld [vmem:[%s1435_s10] sm:$0xf] }
  0x2f   : > { %527 = vmatpush.msra.mxu2 %v420_v51  ;;  %483 = vmatpush.msra.mxu0 %v387_v53  ;;  %v457_v11 = vld [vmem:[%s1430_s5] sm:$0xff] }
  0x30   : > { %547 = vmatpush.msra.mxu3 %v436_v52  ;;  %503 = vmatpush.msra.mxu1 %v403_v54  ;;  %v460_v15 = vld [vmem:[%s1433_s8] sm:$0xf] }
  0x31   : > { %528 = vmatpush.msra.mxu2 %v419_v55  ;;  %484 = vmatpush.msra.mxu0 %v386_v57  ;;  %v459_v25 = vld [vmem:[%s1432_s7] sm:$0xf] }
  0x32   : > { %548 = vmatpush.msra.mxu3 %v435_v56  ;;  %504 = vmatpush.msra.mxu1 %v402_v58  ;;  %v461_v32 = vld [vmem:[%s1434_s9] sm:$0xf] }
  0x33   : > { %529 = vmatpush.msra.mxu2 %v418_v59  ;;  %485 = vmatpush.msra.mxu0 %v385_v61  ;;  %v449_v40 = vld [vmem:[%s1428_s3] sm:$0xff] }
  0x34   : > { %549 = vmatpush.msra.mxu3 %v434_v60  ;;  %505 = vmatpush.msra.mxu1 %v401_v62  ;;  %v511_v3 = vld.sshfl [vmem:[#allocation1] sm:$0xff pattern:$0x75316420]  ;;  %v512_v4 = vld.sshfl [vmem:[#allocation1 + $0x8] sm:$0xff pattern:$0x75316420] }
  0x35   : > { %530 = vmatpush.msra.mxu2 %v417_v63  ;;  %486 = vmatmul.f32.vlgmr.msra.gmra.mxu0 %v466_v1  ;;  %v453_v43 = vld [vmem:[%s1429_s4] sm:$0xff] }
  0x36   : > { %550 = vmatpush.msra.mxu3 %v433_v0  ;;  %506 = vmatmul.f32.vlgmr.msra.gmra.mxu1 %v467_v2 }
  0x37   : > { %531 = vmatmul.f32.vlgmr.msra.gmra.mxu2 %v511_v3  ;;  %551 = vmatmul.f32.vlgmr.msra.gmra.mxu3 %v512_v4 }
  0x38   : > { %954 = vset.pattern.permute.xlu0 %v1028_v6  ;;  %955 = vset.pattern.permute.xlu1 %v1028_v6 }
  0x39   : > { %557 = vperm.xlu0 %954, %v458_v5   ;;  %623 = vperm.xlu1 %955, %v460_v15  }
  0x41   : > { %671 = vperm.xlu0 %954, %v462_v7  }
  0xab   : > { %v558_v16 = vpop.permute.xlu0 %557  ;;  %v624_v33 = vpop.permute.xlu1 %623 }
  0xb2   : > { %v487_v8 = vpop.f32.mrf.mxu0 }
  0xb3   : > { %v507_v9 = vpop.f32.mrf.mxu1  ;;  %v672_v46 = vpop.permute.xlu0 %671 }
  0xb4   : > { %v508_v10 = vadd.f32 %v507_v9, %v487_v8 }
  0xb6   : > { %895 = vmatpush.msk.msrb.mxu0 %vm564_vm0, %v508_v10 }
  0xb7   : > { %896 = vmatmul.msk.f32.vlgmr.msrb.gmra.mxu0 %vm560_vm1, %v457_v11 }
  0xb8   : > { %734 = vmatpush.msra.mxu0 %v451_v35 }
  0xba   : > { %v532_v12 = vpop.f32.mrf.mxu2  ;;  %v552_v13 = vpop.f32.mrf.mxu3  ;;  %735 = vmatpush.msra.mxu0 %v449_v40 }
  0xbb   : > { %v553_v14 = vadd.f32 %v552_v13, %v532_v12 }
  0xbd   : > { %897 = vmatpush.msk.msrb.mxu1 %vm564_vm0, %v553_v14 }
  0xbe   : > { %898 = vmatmul.msk.f32.vlgmr.msrb.gmra.mxu1 %vm560_vm1, %v457_v11 }
  0xbf   : > { %754 = vmatpush.msra.mxu1 %v452_v36 }
  0xc1   : > { %755 = vmatpush.msra.mxu1 %v450_v42 }
 0x134   : > { %v585_v17 = vpop.f32.mrf.mxu0 }
 0x135   : > { %v586_v18 = vadd.f32 %v585_v17, %v558_v16 }
 0x137   : > { %v611_v19 = vadd.f32 3.0, %v586_v18 }
 0x139   : > { %v612_v20 = vmax.f32 %v611_v19, 0.0 }
 0x13b   : > { %v613_v21 = vmin.f32 %v612_v20, 6.0  ;;  %v608_v23 = vpop.f32.mrf.mxu1 }
 0x13c   : > { %v609_v26 = vadd.f32 %v608_v23, %v558_v16 }
 0x13d   : > { %v614_v22 = vmul.f32 %v613_v21, %v586_v18 }
 0x13e   : > { %v616_v27 = vadd.f32 3.0, %v609_v26 }
 0x13f   : > { %v615_v24 = vmul.f32 0.16666667, %v614_v22 }
 0x140   : > { %v617_v28 = vmax.f32 %v616_v27, 0.0 }
 0x141   : > { %645 = vmatpush.msrb.mxu2 %v615_v24 }
 0x142   : > { %899 = vmatmul.msk.f32.vlgmr.msrb.gmra.mxu2 %vm626_vm2, %v459_v25  ;;  %v618_v29 = vmin.f32 %v617_v28, 6.0 }
 0x143   : > { %777 = vmatpush.msra.mxu2 %v455_v38 }
 0x144   : > { %v619_v30 = vmul.f32 %v618_v29, %v609_v26 }
 0x145   : > { %778 = vmatpush.msra.mxu2 %v453_v43 }
 0x146   : > { %v620_v31 = vmul.f32 0.16666667, %v619_v30 }
 0x148   : > { %692 = vmatpush.msrb.mxu3 %v620_v31 }
 0x149   : > { %901 = vmatmul.msk.f32.vlgmr.msrb.gmra.mxu3 %vm626_vm2, %v461_v32 }
 0x14a   : > { %797 = vmatpush.msra.mxu3 %v456_v39 }
 0x14c   : > { %798 = vmatpush.msra.mxu3 %v454_v44 }
 0x1c5   : > { %v647_v34 = vpop.f32.mrf.mxu2 }
 0x1c6   : > { %v648_v37 = vadd.f32 %v647_v34, %v624_v33 }
 0x1c8   : > { %v900_v41 = vmul.f32 -1.442695, %v648_v37 }
 0x1ca   : > { %956 = vpow2.f32 %v900_v41 }
 0x1cc   : > { %v694_v47 = vpop.f32.mrf.mxu3 }
 0x1cd   : > { %v695_v50 = vadd.f32 %v694_v47, %v672_v46 }
 0x1cf   : > { %v902_v51 = vmul.f32 -1.442695, %v695_v50 }
 0x1d0   : > { %v957_v45 = vpop.eup %956 }
 0x1d1   : > { %v653_v49 = vadd.f32 1.0, %v957_v45 }
 0x1d3   : > { %958 = vrcp.f32 %v653_v49  ;;  %vm659_vm3 = vweird.f32 %v653_v49  ;;  %v665_v55 = vand.u32 2147483648, %v653_v49  ;;  %v663_v58 = vand.u32 2147483647, %v653_v49 }
 0x1d4   : > { %960 = vpow2.f32 %v902_v51 }
 0x1d5   : > { %v666_v60 = vor.u32 1.1754944e-38, %v665_v55  ;;  %vm664_vm6 = vcmp.eq.f32.partialorder %v663_v58, 8.507059e+37 }
 0x1d9   : > { %v959_v52 = vpop.eup %958 }
 0x1da   : > { %v655_v53 = vmul.f32 %v959_v52, %v653_v49  ;;  %v961_v54 = vpop.eup %960  ;;  %vm660_vm4 = vweird.f32 %v959_v52 }
 0x1db   : > { %v700_v57 = vadd.f32 1.0, %v961_v54  ;;  %vm661_vm5 = vmor %vm659_vm3, %vm660_vm4 }
 0x1dc   : > { %v656_v56 = vsub.f32 1.0, %v655_v53 }
 0x1dd   : > { %962 = vrcp.f32 %v700_v57  ;;  %v712_v3 = vand.u32 2147483648, %v700_v57  ;;  %v710_v5 = vand.u32 2147483647, %v700_v57  ;;  %vm706_vm9 = vweird.f32 %v700_v57 }
 0x1de   : > { %v657_v59 = vmul.f32 %v959_v52, %v656_v56 }
 0x1df   : > { %v713_v7 = vor.u32 1.1754944e-38, %v712_v3  ;;  %vm711_vm11 = vcmp.eq.f32.partialorder %v710_v5, 8.507059e+37 }
 0x1e0   : > { %v658_v61 = vadd.f32 %v959_v52, %v657_v59 }
 0x1e2   : > { %v662_v62 = vsel %vm661_vm5, %v959_v52, %v658_v61 }
 0x1e3   : > { %v667_v63 = vsel %vm664_vm6, %v666_v60, %v662_v62  ;;  %v963_v0 = vpop.eup %962 }
 0x1e4   : > { %903 = vmatmul.msk.f32.vlgmr.msra.gmra.mxu0 %vm716_vm7, %v667_v63  ;;  %904 = vmatmul.msk.f32.vlgmr.msra.gmra.mxu1 %vm716_vm7, %v667_v63  ;;  %v702_v1 = vmul.f32 %v963_v0, %v700_v57  ;;  %vm707_vm8 = vweird.f32 %v963_v0 }
 0x1e5   : > { %vm708_vm10 = vmor %vm706_vm9, %vm707_vm8 }
 0x1e6   : > { %v703_v2 = vsub.f32 1.0, %v702_v1 }
 0x1e8   : > { %v704_v4 = vmul.f32 %v963_v0, %v703_v2 }
 0x1ea   : > { %v705_v6 = vadd.f32 %v963_v0, %v704_v4 }
 0x1ec   : > { %v709_v8 = vsel %vm708_vm10, %v963_v0, %v705_v6 }
 0x1ed   : > { %v714_v9 = vsel %vm711_vm11, %v713_v7, %v709_v8 }
 0x1ee   : > { %905 = vmatmul.msk.f32.vlgmr.msra.gmra.mxu2 %vm716_vm7, %v714_v9  ;;  %906 = vmatmul.msk.f32.vlgmr.msra.gmra.mxu3 %vm716_vm7, %v714_v9 }
 0x261   : > { %v757_v10 = vpop.f32.mrf.mxu1  ;;  %v737_v14 = vpop.f32.mrf.mxu0 }
 0x271   : > { %v780_v11 = vpop.f32.mrf.mxu2  ;;  %v800_v12 = vpop.f32.mrf.mxu3 }
 0x272   : > { %v804_v13 = vmul.f32 %v800_v12, %v757_v10  ;;  %v803_v15 = vmul.f32 %v780_v11, %v737_v14 }
 0x274   : > { %v807_v16 = vrot.slane %v804_v13, 4 }
 0x276   : > { %v808_v17 = vsel %vm564_vm0, %v803_v15, %v807_v16 }
 0x277   : > { %v810_v18 = vmul.f32 %v808_v17, %v1291_v48 }
 0x279   : > { %811 = vst [vmem:[%s379_s19] sm:$0xff] %v810_v18 }
 0x27a   : > { %991 = shalt.err (!%p988_p3)
}
 0x27b   : > { %914 = dma.vmem_to_hbm [thread:$0]  (%p1127_p5), %s827_s26, 128, %s829_s13, %s813_s21  }
 0x27c PF: > { %p920_p4 = scmp.ge.s32.totalorder %s1026_s20, 2  ;;  %s840_s25 = sand.u32 1, %s1014_s17  }
 0x27d   : > { %s841_s14 = scalar_lea.sflag [#allocation3], %s840_s25 }
 0x27e   : > { %p917_p7 = pnand %p920_p4, %p1131_p6 }
 0x280   : > { %p918_p8 = pneg %p917_p7 }
 0x282   : > { %1009 = dma.done.wait (%p918_p8), %s841_s14, 128  }
 0x283   : > { %1011 = vsyncadd (%p918_p8), %s841_s14, 4294967168  ;;  %s1442_s19 = sld [smem:[#allocation5_spill]]  ;;  %p21_p9 = scmp.ge.s32.totalorder %s1114_s23, 4  }
 0x284   : > { %s1443_s15 = sld [smem:[#allocation6_spill]]  ;;  %s1444_s17 = smov %s1018_s18 }
 0x285   : > { %s1447_s20 = smov %s1114_s23 }
 0x286   :  { %23 = sbr.rel (!%p21_p9) target bundleno = 3 (0x3), region = 99 }
 0x289   : > { %s1445_s18 = smov %s1442_s19 }
 0x28a   : > { %s1446_s19 = smov %s1443_s15 }
 0x28b   :  { %847 = vsyncpa [#allocation3], 1 }
 0x28c   :  { %849 = vsyncpa [#allocation3 + $0x1], 1 }

</bundles_post_ra>
